<compile_context>
chip_gen: v7x
topology: tpu7x:2x2x1
jax: 0.10.0
libtpu: 0.0.40
codegen_flags: <defaults>
</compile_context>

<pallas_src>
import jax
import jax.numpy as jnp
from jax.experimental import pallas as pl
from jax.experimental.pallas import tpu as pltpu


def _round_up(x, m):
    return (x + m - 1) // m * m


def _mlp_kernel(x_ref, w1_ref, b1_ref, w2_ref, b2_ref, w3_ref, b3_ref, o_ref):
    # Layer 1: bf16 MXU matmul with f32 accumulation, bias + ReLU on the VPU.
    h = jnp.dot(x_ref[...], w1_ref[...], preferred_element_type=jnp.float32)
    h = jnp.maximum(h + b1_ref[...], 0.0)
    # Layer 2: cast activations to bf16 for the MXU, accumulate in f32.
    h = jnp.dot(h.astype(w2_ref.dtype), w2_ref[...],
                preferred_element_type=jnp.float32)
    h = jnp.maximum(h + b2_ref[...], 0.0)
    # Layer 3 (num_units -> 1): N=1 matmul wastes the MXU; do it as a VPU
    # elementwise multiply + XLU lane reduction instead.
    o = jnp.sum(h * w3_ref[...], axis=-1, keepdims=True) + b3_ref[...]
    o_ref[...] = o.astype(o_ref.dtype)
    # TODO(synk): emit a lane-dense (1, tb) output row instead of the (tb, 1)
    # column to avoid masked vst.msk stores (low priority; kernel is MXU-bound).


def _vmem_budget_bytes(tb, c_pad, n_pad):
    bf16, f32 = 2, 4
    io = 2 * (tb * c_pad * bf16 + tb * 1 * f32)            # double-buffered x/out tiles
    wts = (c_pad * n_pad * bf16 + n_pad * n_pad * bf16     # single-buffered weights
           + 2 * n_pad * f32 + n_pad * f32 + f32)          # + biases + w3 row + b3
    act = 2 * tb * n_pad * f32                             # live f32 activations
    # Cap well below v7x's 64 MiB physical VMEM to leave compiler headroom.
    return min(io + wts + act + (8 << 20), 48 * 1024 * 1024)


def _pick_batch_tile(B, *, max_tile=256, target_steps=4):
    """Balanced batch tile: aim for >= target_steps grid steps (v7x has 2 TCs;
    >= 2 steps/core gives DMA/compute overlap), tile a multiple of 16 (bf16
    sublane packing), capped at max_tile, with minimal last-tile padding."""
    n_tiles = max(target_steps, pl.cdiv(B, max_tile))
    tb = _round_up(max(pl.cdiv(B, n_tiles), 16), 16)
    return min(tb, max_tile)


def prepare_params(params):
    """One-time pad + bf16 cast of the weights (hoisted out of the forward).

    Takes raw (w1, b1, w2, b2, w3, b3) with W as (in, out) and returns the
    lane-padded, dtype-converted tuple consumed by code_discriminator_forward.
    Zero padding is mathematically a no-op (padded rows/cols contribute 0).
    """
    w1, b1, w2, b2, w3, b3 = params
    C, N = w1.shape
    C_pad, N_pad = _round_up(C, 128), _round_up(N, 128)
    w1_p = jnp.pad(w1.astype(jnp.bfloat16), ((0, C_pad - C), (0, N_pad - N)))
    w2_p = jnp.pad(w2.astype(jnp.bfloat16), ((0, N_pad - N), (0, N_pad - N)))
    b1_p = jnp.pad(jnp.reshape(b1, (1, -1)).astype(jnp.float32),
                   ((0, 0), (0, N_pad - N)))
    b2_p = jnp.pad(jnp.reshape(b2, (1, -1)).astype(jnp.float32),
                   ((0, 0), (0, N_pad - N)))
    w3_row = jnp.pad(jnp.reshape(w3, (1, -1)).astype(jnp.float32),
                     ((0, 0), (0, N_pad - N)))
    b3_p = jnp.reshape(b3, (1, 1)).astype(jnp.float32)
    return (w1_p, b1_p, w2_p, b2_p, w3_row, b3_p)


def code_discriminator_forward(x, label, prepped_params, *, batch_tile=None):
    """Pallas implementation of CodeDiscriminator.forward(x, label).

    `prepped_params` must come from prepare_params() (padded / cast once,
    outside the per-call path)."""
    del label  # forward() ignores the label, exactly like the PyTorch module
    w1_p, b1_p, w2_p, b2_p, w3_row, b3_p = prepped_params
    B, C = x.shape
    C_pad, N_pad = w1_p.shape
    out_dtype = x.dtype

    # Batch tiling: balanced, >= 4 steps when possible, multiple of 16.
    tb = batch_tile if batch_tile is not None else _pick_batch_tile(B)
    tb = _round_up(max(16, min(tb, _round_up(B, 16))), 16)
    B_pad = _round_up(B, tb)
    grid = (B_pad // tb,)

    # Cast to bf16 FIRST, then one pad covering both batch and code dims.
    x_p = jnp.pad(x.astype(jnp.bfloat16), ((0, B_pad - B), (0, C_pad - C)))

    const = lambda i: (0, 0)              # weights/biases resident across batch tiles
    resident = dict(pipeline_mode=pl.Buffered(1))  # invariant -> single-buffered

    out = pl.pallas_call(
        _mlp_kernel,
        out_shape=jax.ShapeDtypeStruct((B_pad, 1), out_dtype),
        grid_spec=pltpu.PrefetchScalarGridSpec(
            num_scalar_prefetch=0,
            grid=grid,
            in_specs=[
                pl.BlockSpec((tb, C_pad), lambda i: (i, 0)),
                pl.BlockSpec((C_pad, N_pad), const, **resident),
                pl.BlockSpec((1, N_pad), const, **resident),
                pl.BlockSpec((N_pad, N_pad), const, **resident),
                pl.BlockSpec((1, N_pad), const, **resident),
                pl.BlockSpec((1, N_pad), const, **resident),
                pl.BlockSpec((1, 1), const, **resident),
            ],
            out_specs=pl.BlockSpec((tb, 1), lambda i: (i, 0)),
        ),
        compiler_params=pltpu.CompilerParams(
            dimension_semantics=("parallel",),
            vmem_limit_bytes=_vmem_budget_bytes(tb, C_pad, N_pad),
        ),
        # TODO(synk): if num_units is scaled up (>~2k), add a K-tiled reduction
        # grid axis for w2 with an accumulator scratch (P3 pattern) for v7x VMEM.
    )(x_p, w1_p, b1_p, w2_p, b2_p, w3_row, b3_p)

    return out[:B] if B_pad != B else out


def init_params(key, code_size, num_units):
    """Deterministic init matching the PyTorch Linear shapes (stored as (in, out))."""
    ks = jax.random.split(key, 6)

    def uniform(k, shape, fan_in):
        bound = 1.0 / jnp.sqrt(fan_in)
        return jax.random.uniform(k, shape, jnp.float32, -bound, bound)

    w1 = uniform(ks[0], (code_size, num_units), code_size)
    b1 = uniform(ks[1], (1, num_units), code_size)
    w2 = uniform(ks[2], (num_units, num_units), num_units)
    b2 = uniform(ks[3], (1, num_units), num_units)
    w3 = uniform(ks[4], (num_units, 1), num_units)
    b3 = uniform(ks[5], (1, 1), num_units)
    return (w1, b1, w2, b2, w3, b3)


def reference_forward(x, params):
    """Pure-JAX reference with the same bf16 operand / f32 accumulation recipe."""
    w1, b1, w2, b2, w3, b3 = params
    h = jnp.dot(x.astype(jnp.bfloat16), w1.astype(jnp.bfloat16),
                preferred_element_type=jnp.float32)
    h = jnp.maximum(h + b1, 0.0)
    h = jnp.dot(h.astype(jnp.bfloat16), w2.astype(jnp.bfloat16),
                preferred_element_type=jnp.float32)
    h = jnp.maximum(h + b2, 0.0)
    return h @ w3 + b3


if __name__ == "__main__":
    # Small shapes consistent with the module (original: code_size=50, num_units=750).
    # code_size=50 / num_units=200 exercise the 128-lane padding path; batch=48
    # with auto tile (tb=16) gives a multi-step pipelined grid.
    batch, code_size, num_units = 48, 50, 200

    key = jax.random.PRNGKey(0)
    k_x, k_p = jax.random.split(key)
    x = jax.random.normal(k_x, (batch, code_size), jnp.float32)
    label = jnp.zeros((batch,), jnp.int32)  # unused, mirrors forward(x, label)
    params = init_params(k_p, code_size, num_units)

    # Pad/cast the weights ONCE (outside the per-call forward path).
    prepped = jax.tree_util.tree_map(jax.block_until_ready, prepare_params(params))

    out = code_discriminator_forward(x, label, prepped)
    out = jax.block_until_ready(out)

    ref = reference_forward(x, params)
    assert out.shape == (batch, 1), out.shape
    assert jnp.allclose(out, ref, atol=2e-2, rtol=2e-2), "mismatch vs reference"

    print("KERNEL_OK")
</pallas_src>

<mosaic_0001>
module attributes {stable_mosaic.version = 11 : i64} {
  func.func @_mlp_kernel(%arg0: i32, %arg1: memref<16x128xbf16, #tpu.memory_space<vmem>>, %arg2: memref<128x256xbf16, #tpu.memory_space<vmem>>, %arg3: memref<1x256xf32, #tpu.memory_space<vmem>>, %arg4: memref<256x256xbf16, #tpu.memory_space<vmem>>, %arg5: memref<1x256xf32, #tpu.memory_space<vmem>>, %arg6: memref<1x256xf32, #tpu.memory_space<vmem>>, %arg7: memref<1x1xf32, #tpu.memory_space<vmem>>, %arg8: memref<16x1xf32, #tpu.memory_space<vmem>>) attributes {dimension_semantics = [#tpu.dimension_semantics<parallel>], iteration_bounds = array<i64: 3>, scalar_prefetch = 0 : i64, scratch_operands = 0 : i64, tpu.core_type = #tpu.core_type<tc>, window_params = [{transform_indices = @transform_0, window_bounds = array<i64: 16, 128>}, {pipeline_mode = #tpu.pipeline_mode<synchronous>, transform_indices = @transform_1, window_bounds = array<i64: 128, 256>}, {pipeline_mode = #tpu.pipeline_mode<synchronous>, transform_indices = @transform_2, window_bounds = array<i64: 1, 256>}, {pipeline_mode = #tpu.pipeline_mode<synchronous>, transform_indices = @transform_3, window_bounds = array<i64: 256, 256>}, {pipeline_mode = #tpu.pipeline_mode<synchronous>, transform_indices = @transform_4, window_bounds = array<i64: 1, 256>}, {pipeline_mode = #tpu.pipeline_mode<synchronous>, transform_indices = @transform_5, window_bounds = array<i64: 1, 256>}, {pipeline_mode = #tpu.pipeline_mode<synchronous>, transform_indices = @transform_6, window_bounds = array<i64: 1, 1>}, {transform_indices = @transform_7, window_bounds = array<i64: 16, 1>}]} {
    %c0 = arith.constant 0 : index
    %c0_0 = arith.constant 0 : index
    %0 = vector.load %arg1[%c0, %c0_0] : memref<16x128xbf16, #tpu.memory_space<vmem>>, vector<16x128xbf16>
    %c0_1 = arith.constant 0 : index
    %c0_2 = arith.constant 0 : index
    %1 = vector.load %arg2[%c0_1, %c0_2] : memref<128x256xbf16, #tpu.memory_space<vmem>>, vector<128x256xbf16>
    %cst = arith.constant dense<0.000000e+00> : vector<16x256xf32>
    %2 = tpu.matmul %0, %1, %cst {dimension_numbers = #tpu.dot_dimension_numbers<[1], [0], [0], [1], [0, 0, 1, 1], [], []>} : vector<16x128xbf16>, vector<128x256xbf16>, vector<16x256xf32> -> vector<16x256xf32>
    %c0_3 = arith.constant 0 : index
    %c0_4 = arith.constant 0 : index
    %3 = vector.load %arg3[%c0_3, %c0_4] : memref<1x256xf32, #tpu.memory_space<vmem>>, vector<1x256xf32>
    %4 = vector.broadcast %3 : vector<1x256xf32> to vector<16x256xf32>
    %5 = arith.addf %2, %4 : vector<16x256xf32>
    %cst_5 = arith.constant 0.000000e+00 : f32
    %6 = vector.broadcast %cst_5 : f32 to vector<16x256xf32>
    %7 = arith.maximumf %5, %6 : vector<16x256xf32>
    %8 = arith.truncf %7 : vector<16x256xf32> to vector<16x256xbf16>
    %c0_6 = arith.constant 0 : index
    %c0_7 = arith.constant 0 : index
    %9 = vector.load %arg4[%c0_6, %c0_7] : memref<256x256xbf16, #tpu.memory_space<vmem>>, vector<256x256xbf16>
    %cst_8 = arith.constant dense<0.000000e+00> : vector<16x256xf32>
    %10 = tpu.matmul %8, %9, %cst_8 {dimension_numbers = #tpu.dot_dimension_numbers<[1], [0], [0], [1], [0, 0, 1, 1], [], []>} : vector<16x256xbf16>, vector<256x256xbf16>, vector<16x256xf32> -> vector<16x256xf32>
    %c0_9 = arith.constant 0 : index
    %c0_10 = arith.constant 0 : index
    %11 = vector.load %arg5[%c0_9, %c0_10] : memref<1x256xf32, #tpu.memory_space<vmem>>, vector<1x256xf32>
    %12 = vector.broadcast %11 : vector<1x256xf32> to vector<16x256xf32>
    %13 = arith.addf %10, %12 : vector<16x256xf32>
    %cst_11 = arith.constant 0.000000e+00 : f32
    %14 = vector.broadcast %cst_11 : f32 to vector<16x256xf32>
    %15 = arith.maximumf %13, %14 : vector<16x256xf32>
    %c0_12 = arith.constant 0 : index
    %c0_13 = arith.constant 0 : index
    %16 = vector.load %arg6[%c0_12, %c0_13] : memref<1x256xf32, #tpu.memory_space<vmem>>, vector<1x256xf32>
    %17 = vector.broadcast %16 : vector<1x256xf32> to vector<16x256xf32>
    %18 = arith.mulf %15, %17 : vector<16x256xf32>
    %cst_14 = arith.constant dense<0.000000e+00> : vector<16xf32>
    %19 = vector.multi_reduction <add>, %18, %cst_14 [1] : vector<16x256xf32> to vector<16xf32>
    %20 = vector.shape_cast %19 : vector<16xf32> to vector<16x1xf32>
    %c0_15 = arith.constant 0 : index
    %c0_16 = arith.constant 0 : index
    %21 = vector.load %arg7[%c0_15, %c0_16] : memref<1x1xf32, #tpu.memory_space<vmem>>, vector<1x1xf32>
    %22 = vector.broadcast %21 : vector<1x1xf32> to vector<16x1xf32>
    %23 = arith.addf %20, %22 : vector<16x1xf32>
    %c0_17 = arith.constant 0 : index
    %c0_18 = arith.constant 0 : index
    %24 = vector.load %arg8[%c0_17, %c0_18] : memref<16x1xf32, #tpu.memory_space<vmem>>, vector<16x1xf32>
    tpu.vector_store %arg8[%c0_17, %c0_18], %23 {strides = array<i32>} : memref<16x1xf32, #tpu.memory_space<vmem>>, vector<16x1xf32>,
    return
  }
  func.func @transform_0(%arg0: i32) -> (i32, i32) {
    %c0_i32 = arith.constant 0 : i32
    %c0_i32_0 = arith.constant 0 : i32
    return %arg0, %c0_i32 : i32, i32
  }
  func.func @transform_1(%arg0: i32) -> (i32, i32) {
    %c0_i32 = arith.constant 0 : i32
    %c0_i32_0 = arith.constant 0 : i32
    %c0_i32_1 = arith.constant 0 : i32
    return %c0_i32, %c0_i32_0 : i32, i32
  }
  func.func @transform_2(%arg0: i32) -> (i32, i32) {
    %c0_i32 = arith.constant 0 : i32
    %c0_i32_0 = arith.constant 0 : i32
    %c0_i32_1 = arith.constant 0 : i32
    return %c0_i32, %c0_i32_0 : i32, i32
  }
  func.func @transform_3(%arg0: i32) -> (i32, i32) {
    %c0_i32 = arith.constant 0 : i32
    %c0_i32_0 = arith.constant 0 : i32
    %c0_i32_1 = arith.constant 0 : i32
    return %c0_i32, %c0_i32_0 : i32, i32
  }
  func.func @transform_4(%arg0: i32) -> (i32, i32) {
    %c0_i32 = arith.constant 0 : i32
    %c0_i32_0 = arith.constant 0 : i32
    %c0_i32_1 = arith.constant 0 : i32
    return %c0_i32, %c0_i32_0 : i32, i32
  }
  func.func @transform_5(%arg0: i32) -> (i32, i32) {
    %c0_i32 = arith.constant 0 : i32
    %c0_i32_0 = arith.constant 0 : i32
    %c0_i32_1 = arith.constant 0 : i32
    return %c0_i32, %c0_i32_0 : i32, i32
  }
  func.func @transform_6(%arg0: i32) -> (i32, i32) {
    %c0_i32 = arith.constant 0 : i32
    %c0_i32_0 = arith.constant 0 : i32
    %c0_i32_1 = arith.constant 0 : i32
    return %c0_i32, %c0_i32_0 : i32, i32
  }
  func.func @transform_7(%arg0: i32) -> (i32, i32) {
    %c0_i32 = arith.constant 0 : i32
    %c0_i32_0 = arith.constant 0 : i32
    return %arg0, %c0_i32 : i32, i32
  }
}

</mosaic_0001>

<bundles_post_ra>
// kernel: tpu_custom_call.1
= control target key start
LH: loop header
LB: loop body
LE: loop exit
PB: predicated region body
PF: predicated region fallthrough
CT: control target
= control target key end

     0   :  { %s1444_s0 = inlined_call_operand.hbm [shape: bf16[48,128], index: 0, kind: input, shape index: {}]   ;;  %s1445_s1 = inlined_call_operand.hbm [shape: bf16[128,256], index: 1, kind: input, shape index: {}]   ;;  %s1446_s2 = inlined_call_operand.vmem [shape: f32[1,256], index: 2, kind: input, shape index: {}]   ;;  %s1447_s3 = inlined_call_operand.hbm [shape: bf16[256,256], index: 3, kind: input, shape index: {}]   ;;  %s1448_s4 = inlined_call_operand.vmem [shape: f32[1,256], index: 4, kind: input, shape index: {}]   ;;  %s1449_s5 = inlined_call_operand.vmem [shape: f32[1,256], index: 5, kind: input, shape index: {}]   ;;  %s1450_s6 = inlined_call_operand.<no memory space> [shape: f32[1,1], index: 6, kind: input, shape index: {}]   ;;  %s1451_s7 = inlined_call_operand.vmem [shape: f32[48,1], index: 7, kind: output, shape index: {}]  }
   0x1   :  { %v12_v0 = vstv %s1450_s6 }
   0x2   :  { %13 = vst [vmem:[#allocation2] sm:$0x1] %v12_v0 }
   0x3   :  { %14 = vsyncpa [#allocation4], 0 }
   0x4   :  { %16 = vsyncpa [#allocation4 + $0x1], 0 }
   0x5   :  { %17 = vsyncpa [#allocation6], 0  ;;  %s1252_s26 = smov 0   ;;  %s1254_s27 = smov 0  }
   0x6   :  { %s1256_s28 = smov 0   ;;  %s1258_s29 = smov 0  }
   0x7 LB: > { %s869_s6 = sadd.s32 4294967295, %s1199_s29   ;;  %p43_p0 = scmp.ne.s32.totalorder %s1191_s27, %s1187_s26  ;;  %s1199_s29 = sphi %s1258_s29, %s1467_s29   ;;  %s1195_s28 = sphi %s1256_s28, %s1466_s28   ;;  %s1191_s27 = sphi %s1254_s27, %s1465_s27   ;;  %s1187_s26 = sphi %s1252_s26, %s1464_s26  }
   0x8   : > { %p1274_p1 = scmp.eq.s32.totalorder %s869_s6, 0  ;;  %p871_p2 = scmp.ge.s32.totalorder %s1199_s29, 1 }
   0x9   : > { %p206_p3 = scmp.lt.s32.totalorder %s1199_s29, 4  ;;  %s1201_s10 = smov [#allocation5]  }
   0xa   : > { %s1456_s30 = scalar_select %p1274_p1, 1, 0 }
   0xb   : > { %p1282_p4 = por %p1274_p1, %p43_p0  ;;  %p1286_p5 = pnand %p871_p2, %p206_p3 }
   0xc   : > { %s218_s11 = sshll.u32 %s1201_s10, 4  ;;  %s1202_s13 = smov [#allocation7]   ;;  %s219_s11 = int_to_ptr.vmem [resolvable:$true] %s218_s11 }
   0xd   : > { %s1457_s8 = scalar_select %p1282_p4, 1, 0 }
   0xe   : > { %s1458_s9 = scalar_select %p1286_p5, 1, 0 }
   0xf   : > { %p947_p6 = pneg %p1286_p5  ;;  %s234_s14 = sshll.u32 %s1202_s13, 4  ;;  %s1298_s14 = int_to_ptr.vmem [resolvable:$true] %s234_s14 }
  0x10   : > { %s1075_s17 = scalar_lea.hbm %s1445_s1, 2048 }
  0x11   : > { %p1294_p7 = pnand %p947_p6, %p1274_p1  ;;  %p1076_p8 = scmp.ne.s32.totalorder %s1445_s1, %s1075_s17 }
  0x12   : > { %p1082_p12 = scmp.lt.u32.totalorder %s1075_s17, %s1445_s1 }
  0x13   : > { %p1077_p9 = pneg %p1294_p7 }
  0x15   : > { %p1078_p10 = pnand %p1077_p9, %p1076_p8 }
  0x17   : > { %p1079_p11 = pneg %p1078_p10 }
  0x19   : > { %p1084_p13 = pnand %p1082_p12, %p1079_p11 }
  0x1b   : > { %1087 = shalt.err (!%p1084_p13)
}
  0x1c   : > { %s1088_s22 = scalar_lea.vmem %s219_s11, 2048  ;;  %p1096_p6 = scmp.lt.s32.totalorder %s219_s11, %s219_s11 }
  0x1d   : > { %p1089_p0 = scmp.ne.s32.totalorder %s219_s11, %s1088_s22  ;;  %p1097_p1 = scmp.lt.s32.totalorder %s1088_s22, %s1088_s22 }
  0x1f   : > { %p1091_p2 = pnand %p1089_p0, %p1077_p9  ;;  %p1098_p4 = por %p1097_p1, %p1096_p6 }
  0x21   : > { %p1092_p3 = pneg %p1091_p2 }
  0x23   : > { %p1099_p5 = pnand %p1098_p4, %p1092_p3 }
  0x25   : > { %1102 = shalt.err (!%p1099_p5)
}
  0x26   : > { %s1203_s23 = smov 128   ;;  %s1204_s24 = smov 8  }
  0x27   : > { %950 = dma.hbm_to_vmem [thread:$0]  (!%p1294_p7), %s1445_s1, 2048, %s219_s11, [#allocation6], %s1203_s23, %s1203_s23, %s1204_s24  }
  0x28   : > { %s1103_s15 = scalar_lea.hbm %s1447_s3, 4096 }
  0x29   : > { %p1104_p8 = scmp.ne.s32.totalorder %s1447_s3, %s1103_s15  ;;  %p1110_p5 = scmp.lt.u32.totalorder %s1103_s15, %s1447_s3 }
  0x2b   : > { %p1106_p1 = pnand %p1104_p8, %p1077_p9 }
  0x2d   : > { %p1107_p4 = pneg %p1106_p1 }
  0x2f   : > { %p1112_p10 = pnand %p1110_p5, %p1107_p4 }
  0x31   : > { %1115 = shalt.err (!%p1112_p10)
}
  0x32   : > { %s1116_s11 = scalar_lea.vmem %s1298_s14, 4096  ;;  %p1124_p0 = scmp.lt.s32.totalorder %s1298_s14, %s1298_s14 }
  0x33   : > { %p1117_p11 = scmp.ne.s32.totalorder %s1298_s14, %s1116_s11  ;;  %p1125_p2 = scmp.lt.s32.totalorder %s1116_s11, %s1116_s11 }
  0x35   : > { %p1119_p12 = pnand %p1117_p11, %p1077_p9  ;;  %p1126_p3 = por %p1125_p2, %p1124_p0 }
  0x37   : > { %p1120_p13 = pneg %p1119_p12 }
  0x39   : > { %p1127_p6 = pnand %p1126_p3, %p1120_p13 }
  0x3b   : > { %1130 = shalt.err (!%p1127_p6)
}
  0x3c   : > { %953 = dma.hbm_to_vmem [thread:$0]  (!%p1294_p7), %s1447_s3, 4096, %s1298_s14, [#allocation6], %s1203_s23, %s1203_s23, %s1204_s24  }
  0x3d   : > { %s1348_s22 = sadd.s32 1, %s1199_s29   ;;  %s30_s25 = sadd.s32 1, %s1195_s28 }
  0x3e   : > { %s27_s12 = ssub.s32 %s1199_s29, %s1348_s22  ;;  %p37_p9 = scmp.ne.s32.totalorder %s1195_s28, %s1191_s27 }
  0x3f   : > { %p28_p8 = scmp.eq.s32.totalorder %s27_s12, 0  ;;  %p38_p1 = scmp.eq.s32.totalorder %s1199_s29, 0 }
  0x40   : > { %p960_p4 = scmp.lt.s32.totalorder %s1199_s29, 3  ;;  %s257_s26 = sand.u32 1, %s1195_s28  }
  0x41   : > { %s1359_s10 = scalar_select %p28_p8, %s1195_s28, %s30_s25  }
  0x42   : > { %p39_p5 = por %p38_p1, %p37_p9  ;;  %s875_s13 = sshll.u32 %s257_s26, 3 }
  0x43   : > { %s936_s15 = sshll.u32 %s1199_s29, 7  ;;  %s261_s14 = scalar_lea.vmem [#allocation3], %s875_s13 }
  0x44   : > { %s1365_s18 = scalar_lea.hbm %s1444_s0, %s936_s15  ;;  %s268_s23 = sshll.u32 %s261_s14, 4  ;;  %s1371_s23 = int_to_ptr.vmem [resolvable:$true] %s268_s23 }
  0x45   : > { %p1367_p7 = pnand %p960_p4, %p39_p5  ;;  %s1373_s19 = scalar_lea.sflag [#allocation4], %s257_s26 }
  0x46   : > { %s1131_s11 = scalar_lea.hbm %s1365_s18, 128  ;;  %s1136_s25 = scalar_lea.hbm %s1444_s0, 384 }
  0x47   : > { %p1132_p10 = scmp.ne.s32.totalorder %s1365_s18, %s1131_s11  ;;  %p1133_p11 = pneg %p1367_p7 }
  0x48   : > { %p1137_p0 = scmp.lt.u32.totalorder %s1365_s18, %s1444_s0  ;;  %p1138_p2 = scmp.lt.u32.totalorder %s1136_s25, %s1131_s11 }
  0x49   : > { %p1134_p12 = pnand %p1133_p11, %p1132_p10  ;;  %p1140_p6 = scmp.lt.u32.totalorder %s1131_s11, %s1365_s18 }
  0x4a   : > { %p1139_p3 = por %p1138_p2, %p1137_p0 }
  0x4b   : > { %p1135_p13 = pneg %p1134_p12 }
  0x4c   : > { %p1141_p9 = por %p1140_p6, %p1139_p3 }
  0x4e   : > { %p1142_p8 = pnand %p1141_p9, %p1135_p13 }
  0x50   : > { %1145 = shalt.err (!%p1142_p8)
}
  0x51   : > { %s1146_s26 = scalar_lea.vmem %s1371_s23, 128  ;;  %s1205_s15 = smov [#allocation3]  }
  0x52   : > { %p1147_p1 = scmp.ne.s32.totalorder %s1371_s23, %s1146_s26  ;;  %s1151_s16 = sshll.u32 %s1205_s15, 4  ;;  %s1152_s16 = int_to_ptr.vmem [resolvable:$false] %s1151_s16 }
  0x53   : > { %s1153_s17 = scalar_lea.vmem %s1152_s16, 256  ;;  %p1154_p10 = scmp.lt.s32.totalorder %s1371_s23, %s1152_s16 }
  0x54   : > { %p1149_p4 = pnand %p1147_p1, %p1133_p11  ;;  %p1155_p12 = scmp.lt.s32.totalorder %s1153_s17, %s1146_s26 }
  0x56   : > { %p1150_p5 = pneg %p1149_p4  ;;  %p1156_p0 = por %p1155_p12, %p1154_p10 }
  0x58   : > { %p1157_p2 = pnand %p1156_p0, %p1150_p5 }
  0x5a   : > { %1160 = shalt.err (!%p1157_p2)
}
  0x5b   : > { %s1206_s14 = smov 64   ;;  %s1207_s11 = smov 4  }
  0x5c   : > { %957 = dma.hbm_to_vmem [thread:$0]  (!%p1367_p7), %s1365_s18, 128, %s1371_s23, %s1373_s19, %s1206_s14, %s1206_s14, %s1207_s11  }
  0x5d   : > { %p1461_p11 = scmp.ne.s32.totalorder %s1458_s9, 0 }
  0x5e   : > { %s282_s20 = sand.u32 (!%p1461_p11), 1, %s1191_s27   ;;  %p1462_p13 = scmp.ne.s32.totalorder (!%p1461_p11), %s1457_s8, 0 }
  0x5f   : > { %280 = sbr.rel (%p1461_p11) target bundleno = 731 (0x2db), region = 48  ;;  %s1404_s21 = sshll.u32 (!%p1461_p11), %s282_s20, 3 }
  0x60   : > { %s283_s25 = scalar_lea.sflag (!%p1461_p11), [#allocation4], %s282_s20  ;;  %s286_s12 = scalar_lea.vmem (!%p1461_p11), [#allocation3], %s1404_s21 }
  0x66   : > { %1178 = dma.done.wait (%p1462_p13), %s283_s25, 128  }
  0x67   : > { %1180 = vsyncadd (%p1462_p13), %s283_s25, 4294967168  ;;  %p1463_p3 = scmp.ne.s32.totalorder %s1456_s30, 0 }
  0x69   : > { %1182 = dma.done.wait (%p1463_p3), [#allocation6], 6144  }
  0x6a   : > { %1184 = vsyncadd (%p1463_p3), [#allocation6], 4294961152  ;;  %v1208_v1 = vmov 0   ;;  %v1002_v2 = vld [vmem:[#allocation5 + $0x4] ss:$8 sps:$4 sm:$0xff]   ;;  %v1026_v29 = vld [vmem:[%s286_s12] sm:$0xff]   ;;  %v353_v51 = vlaneseq }
  0x6b   : > { %481 = vmatprep.mubr.bf16.mxu0 %v1208_v1  ;;  %v1004_v3 = vld [vmem:[#allocation5] ss:$8 sps:$4 sm:$0xff]   ;;  %449 = vmatprep.subr.bf16.mxu0 %v1002_v2  ;;  %v1005_v4 = vld [vmem:[#allocation5 + $0x14] ss:$8 sps:$4 sm:$0xff]   ;;  %v1007_v5 = vld [vmem:[#allocation5 + $0x10] ss:$8 sps:$4 sm:$0xff]  }
  0x6c   : > { %450 = vmatpush1.bf16.msra.mxu0 %v1004_v3  ;;  %v1008_v6 = vld [vmem:[#allocation5 + $0x24] ss:$8 sps:$4 sm:$0xff]   ;;  %v1010_v7 = vld [vmem:[#allocation5 + $0x20] ss:$8 sps:$4 sm:$0xff]   ;;  %v1011_v8 = vld [vmem:[#allocation5 + $0x34] ss:$8 sps:$4 sm:$0xff]  }
  0x6d   : > { %451 = vmatprep.subr.bf16.mxu0 %v1005_v4  ;;  %v1013_v9 = vld [vmem:[#allocation5 + $0x30] ss:$8 sps:$4 sm:$0xff]   ;;  %v1014_v10 = vld [vmem:[#allocation5 + $0x44] ss:$8 sps:$4 sm:$0xff]   ;;  %v1029_v12 = vld [vmem:[#allocation7] ss:$8 sps:$4 sm:$0xff]  }
  0x6e   : > { %v1027_v11 = vld [vmem:[#allocation7 + $0x4] ss:$8 sps:$4 sm:$0xff]   ;;  %v1030_v13 = vld [vmem:[#allocation7 + $0x14] ss:$8 sps:$4 sm:$0xff]   ;;  %v1016_v14 = vld [vmem:[#allocation5 + $0x40] ss:$8 sps:$4 sm:$0xff]  }
  0x6f   : > { %702 = vmatprep.subr.bf16.mxu1 %v1027_v11  ;;  %v1032_v15 = vld [vmem:[#allocation7 + $0x10] ss:$8 sps:$4 sm:$0xff]   ;;  %v1017_v16 = vld [vmem:[#allocation5 + $0x54] ss:$8 sps:$4 sm:$0xff]   ;;  %v1033_v17 = vld [vmem:[#allocation7 + $0x24] ss:$8 sps:$4 sm:$0xff]  }
  0x70   : > { %452 = vmatpush1.bf16.msra.mxu0 %v1007_v5  ;;  %703 = vmatpush1.bf16.msra.mxu1 %v1029_v12  ;;  %v1019_v18 = vld [vmem:[#allocation5 + $0x50] ss:$8 sps:$4 sm:$0xff]   ;;  %v1035_v19 = vld [vmem:[#allocation7 + $0x20] ss:$8 sps:$4 sm:$0xff]   ;;  %v1020_v20 = vld [vmem:[#allocation5 + $0x64] ss:$8 sps:$4 sm:$0xff]  }
  0x71   : > { %453 = vmatprep.subr.bf16.mxu0 %v1008_v6  ;;  %704 = vmatprep.subr.bf16.mxu1 %v1030_v13  ;;  %v1036_v21 = vld [vmem:[#allocation7 + $0x34] ss:$8 sps:$4 sm:$0xff]   ;;  %v1022_v22 = vld [vmem:[#allocation5 + $0x60] ss:$8 sps:$4 sm:$0xff]   ;;  %v1038_v23 = vld [vmem:[#allocation7 + $0x30] ss:$8 sps:$4 sm:$0xff]  }
  0x72   : > { %v1023_v24 = vld [vmem:[#allocation5 + $0x74] ss:$8 sps:$4 sm:$0xff]   ;;  %v1039_v25 = vld [vmem:[#allocation7 + $0x44] ss:$8 sps:$4 sm:$0xff]   ;;  %v1025_v26 = vld [vmem:[#allocation5 + $0x70] ss:$8 sps:$4 sm:$0xff]  }
  0x73   : > { %v1041_v27 = vld [vmem:[#allocation7 + $0x40] ss:$8 sps:$4 sm:$0xff]   ;;  %v1042_v28 = vld [vmem:[#allocation7 + $0x54] ss:$8 sps:$4 sm:$0xff]   ;;  %v1044_v30 = vld [vmem:[#allocation7 + $0x50] ss:$8 sps:$4 sm:$0xff]  }
  0x74   : > { %454 = vmatpush1.bf16.msra.mxu0 %v1010_v7  ;;  %705 = vmatpush1.bf16.msra.mxu1 %v1032_v15  ;;  %v1045_v31 = vld [vmem:[#allocation7 + $0x64] ss:$8 sps:$4 sm:$0xff]   ;;  %v1047_v32 = vld [vmem:[#allocation7 + $0x60] ss:$8 sps:$4 sm:$0xff]   ;;  %v1048_v33 = vld [vmem:[#allocation7 + $0x74] ss:$8 sps:$4 sm:$0xff]  }
  0x75   : > { %455 = vmatprep.subr.bf16.mxu0 %v1011_v8  ;;  %706 = vmatprep.subr.bf16.mxu1 %v1033_v17  ;;  %v1050_v34 = vld [vmem:[#allocation7 + $0x70] ss:$8 sps:$4 sm:$0xff]   ;;  %v1051_v35 = vld [vmem:[#allocation7 + $0x84] ss:$8 sps:$4 sm:$0xff]   ;;  %v1053_v36 = vld [vmem:[#allocation7 + $0x80] ss:$8 sps:$4 sm:$0xff]  }
  0x76   : > { %v1054_v37 = vld [vmem:[#allocation7 + $0x94] ss:$8 sps:$4 sm:$0xff]   ;;  %v1056_v38 = vld [vmem:[#allocation7 + $0x90] ss:$8 sps:$4 sm:$0xff]   ;;  %v1057_v39 = vld [vmem:[#allocation7 + $0xa4] ss:$8 sps:$4 sm:$0xff]  }
  0x77   : > { %v1059_v40 = vld [vmem:[#allocation7 + $0xa0] ss:$8 sps:$4 sm:$0xff]   ;;  %v1060_v41 = vld [vmem:[#allocation7 + $0xb4] ss:$8 sps:$4 sm:$0xff]   ;;  %v1062_v42 = vld [vmem:[#allocation7 + $0xb0] ss:$8 sps:$4 sm:$0xff]  }
  0x78   : > { %456 = vmatpush1.bf16.msra.mxu0 %v1013_v9  ;;  %707 = vmatpush1.bf16.msra.mxu1 %v1035_v19  ;;  %v1063_v43 = vld [vmem:[#allocation7 + $0xc4] ss:$8 sps:$4 sm:$0xff]   ;;  %v1065_v44 = vld [vmem:[#allocation7 + $0xc0] ss:$8 sps:$4 sm:$0xff]   ;;  %v1066_v45 = vld [vmem:[#allocation7 + $0xd4] ss:$8 sps:$4 sm:$0xff]  }
  0x79   : > { %457 = vmatprep.subr.bf16.mxu0 %v1014_v10  ;;  %708 = vmatprep.subr.bf16.mxu1 %v1036_v21  ;;  %v1068_v46 = vld [vmem:[#allocation7 + $0xd0] ss:$8 sps:$4 sm:$0xff]   ;;  %v1069_v47 = vld [vmem:[#allocation7 + $0xe4] ss:$8 sps:$4 sm:$0xff]   ;;  %v1071_v48 = vld [vmem:[#allocation7 + $0xe0] ss:$8 sps:$4 sm:$0xff]  }
  0x7a   : > { %v1072_v49 = vld [vmem:[#allocation7 + $0xf4] ss:$8 sps:$4 sm:$0xff]   ;;  %v1074_v50 = vld [vmem:[#allocation7 + $0xf0] ss:$8 sps:$4 sm:$0xff]   ;;  %v354_v52 = vshrl.u32 %v353_v51, 7  ;;  %s882_s19 = sshll.u32 %s869_s6, 1 }
  0x7b   : > { %v351_v54 = vld [vmem:[%s1446_s2] sm:$0x3]  ;;  %p327_p7 = scmp.lt.s32.totalorder %s882_s19, 5  ;;  %vm780_vm0 = vcmask 7168  }
  0x7c   : > { %458 = vmatpush1.bf16.msra.mxu0 %v1016_v14  ;;  %709 = vmatpush1.bf16.msra.mxu1 %v1038_v23  ;;  %v355_v53 = vsub.s32 0, %v354_v52  ;;  %v359_v55 = vsub.s32 1, %v354_v52  ;;  %v530_v8 = vld [vmem:[%s1448_s4] sm:$0x3] }
  0x7d   : > { %459 = vmatprep.subr.bf16.mxu0 %v1017_v16  ;;  %710 = vmatprep.subr.bf16.mxu1 %v1039_v25  ;;  %v749_v11 = vld [vmem:[%s1449_s5] sm:$0x3]  ;;  %s1469_s19 = smov (!%p327_p7, %s882_s19), 5 }
  0x7e   : > { %v356_v56 = vrot.slane %v351_v54, %v355_v53  ;;  %v360_v57 = vrot.slane %v351_v54, %v359_v55  ;;  %v535_v9 = vrot.slane %v530_v8, %v355_v53  ;;  %v539_v10 = vrot.slane %v530_v8, %v359_v55  ;;  %s883_s13 = sshll.u32 %s1469_s19, 3 }
  0x7f   : > { %v754_v15 = vrot.slane %v749_v11, %v355_v53  ;;  %s330_s16 = scalar_lea.vmem %s1451_s7, %s883_s13 }
  0x80   : > { %460 = vmatpush1.bf16.msra.mxu0 %v1019_v18  ;;  %711 = vmatpush1.bf16.msra.mxu1 %v1041_v27  ;;  %v758_v18 = vrot.slane %v749_v11, %v359_v55 }
  0x81   : > { %461 = vmatprep.subr.bf16.mxu0 %v1020_v20  ;;  %712 = vmatprep.subr.bf16.mxu1 %v1042_v28 }
  0x84   : > { %462 = vmatpush1.bf16.msra.mxu0 %v1022_v22  ;;  %713 = vmatpush1.bf16.msra.mxu1 %v1044_v30 }
  0x85   : > { %463 = vmatprep.subr.bf16.mxu0 %v1023_v24  ;;  %714 = vmatprep.subr.bf16.mxu1 %v1045_v31 }
  0x88   : > { %464 = vmatpush1.bf16.msra.mxu0 %v1025_v26  ;;  %715 = vmatpush1.bf16.msra.mxu1 %v1047_v32  ;;  %v933_v32 = vld [vmem:[#allocation2] ss:$0 sm:$0xff] }
  0x89   : > { %716 = vmatprep.subr.bf16.mxu1 %v1048_v33 }
  0x8b   : > { %482 = vmatmul.mubr.bf16.vlgmr.msra.gmra.mrb[0].mxu0 %v1026_v29 }
  0x8c   : > { %717 = vmatpush1.bf16.msra.mxu1 %v1050_v34 }
  0x8d   : > { %718 = vmatprep.subr.bf16.mxu1 %v1051_v35 }
  0x90   : > { %719 = vmatpush1.bf16.msra.mxu1 %v1053_v36 }
  0x91   : > { %720 = vmatprep.subr.bf16.mxu1 %v1054_v37 }
  0x94   : > { %721 = vmatpush1.bf16.msra.mxu1 %v1056_v38 }
  0x95   : > { %722 = vmatprep.subr.bf16.mxu1 %v1057_v39 }
  0x98   : > { %723 = vmatpush1.bf16.msra.mxu1 %v1059_v40 }
  0x99   : > { %724 = vmatprep.subr.bf16.mxu1 %v1060_v41 }
  0x9c   : > { %725 = vmatpush1.bf16.msra.mxu1 %v1062_v42 }
  0x9d   : > { %726 = vmatprep.subr.bf16.mxu1 %v1063_v43 }
  0xa0   : > { %727 = vmatpush1.bf16.msra.mxu1 %v1065_v44 }
  0xa1   : > { %728 = vmatprep.subr.bf16.mxu1 %v1066_v45 }
  0xa4   : > { %729 = vmatpush1.bf16.msra.mxu1 %v1068_v46 }
  0xa5   : > { %730 = vmatprep.subr.bf16.mxu1 %v1069_v47 }
  0xa8   : > { %731 = vmatpush1.bf16.msra.mxu1 %v1071_v48 }
  0xa9   : > { %732 = vmatprep.subr.bf16.mxu1 %v1072_v49 }
  0xac   : > { %733 = vmatpush1.bf16.msra.mxu1 %v1074_v50 }
 0x15e   : > { %v483_v58 = vpop.f32.mrb[0].mxu0 }
 0x15f   : > { %v484_v59 = vadd.f32 %v483_v58, %v356_v56  ;;  %v485_v60 = vpop.f32.mrb[1].mxu0 }
 0x160   : > { %v486_v61 = vadd.f32 %v485_v60, %v360_v57  ;;  %v487_v62 = vpop.f32.mrb[2].mxu0 }
 0x161   : > { %v488_v63 = vadd.f32 %v487_v62, %v356_v56  ;;  %v489_v0 = vpop.f32.mrb[3].mxu0  ;;  %v492_v2 = vmax.f32 %v484_v59, 0.0 }
 0x162   : > { %v490_v1 = vadd.f32 %v489_v0, %v360_v57  ;;  %v493_v4 = vmax.f32 %v486_v61, 0.0 }
 0x163   : > { %v494_v3 = vmax.f32 %v488_v63, 0.0 }
 0x164   : > { %v495_v5 = vmax.f32 %v490_v1, 0.0 }
 0x165   : > { %v496_v6 = vpack.c.bf16 %v494_v3, %v492_v2 }
 0x166   : > { %v497_v7 = vpack.c.bf16 %v495_v5, %v493_v4 }
 0x168   : > { %734 = vmatprep.mubr.bf16.mxu1 %v497_v7 }
 0x169   : > { %735 = vmatmul.mubr.bf16.vlgmr.msra.gmra.mrb[0].mxu1 %v496_v6 }
 0x23c   : > { %v736_v12 = vpop.f32.mrb[0].mxu1 }
 0x23d   : > { %v737_v13 = vadd.f32 %v736_v12, %v535_v9  ;;  %v738_v14 = vpop.f32.mrb[1].mxu1 }
 0x23e   : > { %v739_v16 = vadd.f32 %v738_v14, %v539_v10  ;;  %v740_v17 = vpop.f32.mrb[2].mxu1 }
 0x23f   : > { %v745_v19 = vmax.f32 %v737_v13, 0.0  ;;  %v741_v20 = vadd.f32 %v740_v17, %v535_v9  ;;  %v742_v21 = vpop.f32.mrb[3].mxu1 }
 0x240   : > { %v746_v22 = vmax.f32 %v739_v16, 0.0  ;;  %v743_v23 = vadd.f32 %v742_v21, %v539_v10 }
 0x241   : > { %v747_v24 = vmax.f32 %v741_v20, 0.0  ;;  %v761_v25 = vmul.f32 %v754_v15, %v745_v19 }
 0x242   : > { %v748_v26 = vmax.f32 %v743_v23, 0.0  ;;  %v762_v27 = vmul.f32 %v758_v18, %v746_v22 }
 0x243   : > { %v763_v28 = vmul.f32 %v754_v15, %v747_v24 }
 0x244   : > { %v764_v29 = vmul.f32 %v758_v18, %v748_v26  ;;  %v765_v30 = vadd.f32 %v762_v27, %v761_v25 }
 0x246   : > { %766 = vadd.xlane.f32.xlu0 %v765_v30  ;;  %v768_v31 = vadd.f32 %v764_v29, %v763_v28 }
 0x24a   : > { %769 = vadd.xlane.f32.xlu0 %v768_v31 }
 0x2d3   : > { %v767_v33 = vpop.xlane.xlu0 %766 }
 0x2d4   : > { %v778_v34 = vadd.f32 %v933_v32, %v767_v33 }
 0x2d6   : > { %781 = vst.msk [vmem:[%s330_s16] sm:$0xff] %vm780_vm0, %v778_v34 }
 0x2d7   : > { %v770_v35 = vpop.xlane.xlu0 %769 }
 0x2d8   : > { %v779_v36 = vadd.f32 %v933_v32, %v770_v35 }
 0x2da   : > { %782 = vst.msk [vmem:[%s330_s16 + $0x8] sm:$0xff] %vm780_vm0, %v779_v36 }
 0x2db PF: > { %p20_p6 = scmp.ge.s32.totalorder %s1348_s22, 5   ;;  %s1464_s26 = smov %s1191_s27 }
 0x2dc   : > { %s1465_s27 = smov %s1195_s28  ;;  %s1466_s28 = smov %s1359_s10 }
 0x2dd   : > { %s1467_s29 = smov %s1348_s22  ;;  %22 = sbr.rel (!%p20_p6) target bundleno = 7 (0x7), region = 96 }
 0x2e4   :  { %805 = vsyncpa [#allocation4], 1 }
 0x2e5   :  { %807 = vsyncpa [#allocation4 + $0x1], 1 }
 0x2e6   :  { %808 = vsyncpa [#allocation6], 1 }

</bundles_post_ra>
